<compile_context>
chip_gen: v5e
topology: v5e:2x2
jax: 0.10.0
libtpu: 0.0.40
codegen_flags: <defaults>
</compile_context>

<pallas_src>
import jax
import jax.numpy as jnp
from jax.experimental import pallas as pl
from jax.experimental.pallas import tpu as pltpu


def _round_up(n, m):
    return ((n + m - 1) // m) * m


def _intent_classifier_kernel(x_ref, wt_ref, b_ref, o_ref, acc_ref):
    # x_ref:   (TB, TK)  VMEM (streams over batch and K)
    # wt_ref:  (TK, Lp)  VMEM (pre-transposed, zero-padded weight)
    # b_ref:   (1, Lp)   VMEM (zero-padded bias, resident)
    # o_ref:   (TB, Lp)  VMEM (resident across the K axis)
    # acc_ref: (TB, Lp)  VMEM f32 accumulator scratch
    k = pl.program_id(1)

    @pl.when(k == 0)
    def _():
        acc_ref[...] = jnp.zeros_like(acc_ref)

    acc_ref[...] += jnp.dot(x_ref[...], wt_ref[...],
                            preferred_element_type=jnp.float32)

    @pl.when(k == pl.num_programs(1) - 1)
    def _():
        o_ref[...] = (acc_ref[...] + b_ref[...]).astype(o_ref.dtype)


def intent_classifier(x, weight, bias, dropout_rate=0.0):
    """Forward pass of IntentClassifier.

    x:      (batch, input_dim)
    weight: (num_intent_labels, input_dim)   (PyTorch nn.Linear layout)
    bias:   (num_intent_labels,)
    """
    # Dropout with rate 0.0 / eval mode is the identity.
    # TODO(synk): training-mode dropout (rate > 0) would need
    # pltpu.prng_seed / pltpu.prng_random_bits masking inside the kernel.
    del dropout_rate

    B, D = x.shape
    L, D2 = weight.shape
    assert D == D2

    LANE = 128
    itemsize = jnp.dtype(x.dtype).itemsize
    sublane = max(8, 32 // itemsize)          # 8 f32, 16 bf16, 32 int8/fp8

    # Lane-dense padded label dim.
    Lp = _round_up(max(L, LANE), LANE)

    # --- K (contraction) tiling: only for large, 128-aligned D. ---
    if D % LANE == 0 and D * itemsize > (16 << 10):      # e.g. D > 4096 at f32
        TK = min(D, 2048)
        while D % TK != 0:                               # multiple-of-128 divisor
            TK -= LANE
    else:
        TK = D
    num_k = D // TK

    # --- Batch tile: target ~2 MiB of x DMA per grid step, bounded by a VMEM
    #     row budget and by B itself; multiple of the dtype sublane. ---
    tb_target = _round_up(max((2 << 20) // (TK * itemsize), 1), sublane)
    per_row_bytes = 2 * TK * itemsize + 2 * Lp * itemsize + Lp * 4
    row_budget = max(((16 << 20) // per_row_bytes) // sublane * sublane, sublane)
    TB = max(min(tb_target, row_budget, _round_up(B, sublane)), sublane)

    # Guarantee >=2 batch tiles when possible so v7x can use both TensorCores.
    if B > sublane and pl.cdiv(B, TB) < 2:
        TB = _round_up(pl.cdiv(B, 2), sublane)

    num_b = pl.cdiv(B, TB)

    # Fold the transpose into the zero-pad (single fused XLA op); zero columns
    # in the padded lanes keep padded logits equal to 0 (sliced off below).
    wt_p = jnp.zeros((D, Lp), dtype=x.dtype).at[:, :L].set(weight.T.astype(x.dtype))
    b_p = jnp.zeros((1, Lp), dtype=jnp.float32).at[0, :L].set(bias.astype(jnp.float32))

    # --- VMEM budget, capped at the chip's actual capacity (v7x: 64 MiB). ---
    try:
        vmem_cap = int(pltpu.get_tpu_info().vmem_capacity_bytes)
    except Exception:
        vmem_cap = 64 << 20
    w_bufs = 1 if num_k == 1 else 2
    vmem_bytes = (
        2 * TB * TK * itemsize          # x tiles (double-buffered)
        + w_bufs * TK * Lp * itemsize   # weight (single-buffered if resident)
        + 1 * Lp * 4                    # bias (single-buffered)
        + 2 * TB * Lp * itemsize        # output tiles
        + TB * Lp * 4                   # f32 accumulator scratch
        + (2 << 20)                     # headroom
    )
    vmem_limit = int(min(max(vmem_bytes, 16 << 20), vmem_cap - (8 << 20)))

    cost = pl.CostEstimate(
        flops=2 * B * D * Lp,
        transcendentals=0,
        bytes_accessed=int(itemsize * (B * D + D * Lp + B * Lp) + 4 * Lp),
    )

    # Resident operands: single-buffer (constant index_map => no pipelining win).
    if num_k == 1:
        w_spec = pl.BlockSpec((TK, Lp), lambda i, k: (k, 0),
                              pipeline_mode=pl.Buffered(1))
    else:
        w_spec = pl.BlockSpec((TK, Lp), lambda i, k: (k, 0))
    b_spec = pl.BlockSpec((1, Lp), lambda i, k: (0, 0),
                          pipeline_mode=pl.Buffered(1))

    out_p = pl.pallas_call(
        _intent_classifier_kernel,
        out_shape=jax.ShapeDtypeStruct((B, Lp), x.dtype),
        grid=(num_b, num_k),
        in_specs=[
            pl.BlockSpec((TB, TK), lambda i, k: (i, k)),   # x streams batch/K
            w_spec,
            b_spec,
        ],
        out_specs=pl.BlockSpec((TB, Lp), lambda i, k: (i, 0)),
        scratch_shapes=[pltpu.VMEM((TB, Lp), jnp.float32)],
        compiler_params=pltpu.CompilerParams(
            dimension_semantics=("parallel", "arbitrary"),
            vmem_limit_bytes=vmem_limit,
        ),
        cost_estimate=cost,
    )(x, wt_p, b_p)

    return out_p[:, :L]


if __name__ == "__main__":
    key = jax.random.PRNGKey(0)
    k_x, k_w, k_b = jax.random.split(key, 3)

    batch = 2
    input_dim = 32
    num_intent_labels = 8

    # Deterministic synthetic parameters (nn.Linear shapes).
    x = jax.random.normal(k_x, (batch, input_dim), dtype=jnp.float32)
    weight = jax.random.normal(k_w, (num_intent_labels, input_dim),
                               dtype=jnp.float32) * 0.02
    bias = jax.random.normal(k_b, (num_intent_labels,), dtype=jnp.float32) * 0.02

    out = intent_classifier(x, weight, bias, dropout_rate=0.0)
    out = jax.block_until_ready(out)

    # Sanity check against plain-JAX reference.
    ref = x @ weight.T + bias
    assert out.shape == (batch, num_intent_labels)
    assert jnp.allclose(out, ref, atol=1e-5, rtol=1e-5)

    print("KERNEL_OK")
</pallas_src>

<mosaic_0001>
module attributes {stable_mosaic.version = 11 : i64} {
  func.func @_intent_classifier_kernel(%arg0: i32, %arg1: i32, %arg2: memref<8x32xf32, #tpu.memory_space<vmem>>, %arg3: memref<32x128xf32, #tpu.memory_space<vmem>>, %arg4: memref<1x128xf32, #tpu.memory_space<vmem>>, %arg5: memref<8x128xf32, #tpu.memory_space<vmem>>, %arg6: memref<8x128xf32, #tpu.memory_space<vmem>>) attributes {dimension_semantics = [#tpu.dimension_semantics<parallel>, #tpu.dimension_semantics<arbitrary>], iteration_bounds = array<i64: 1, 1>, scalar_prefetch = 0 : i64, scratch_operands = 1 : i64, tpu.core_type = #tpu.core_type<tc>, window_params = [{transform_indices = @transform_0, window_bounds = array<i64: 8, 32>}, {pipeline_mode = #tpu.pipeline_mode<synchronous>, transform_indices = @transform_1, window_bounds = array<i64: 32, 128>}, {pipeline_mode = #tpu.pipeline_mode<synchronous>, transform_indices = @transform_2, window_bounds = array<i64: 1, 128>}, {transform_indices = @transform_3, window_bounds = array<i64: 8, 128>}]} {
    %c0_i32 = arith.constant 0 : i32
    %0 = arith.cmpi eq, %arg1, %c0_i32 : i32
    %1 = arith.extui %0 : i1 to i32
    %c0_i32_0 = arith.constant 0 : i32
    %2 = arith.cmpi ne, %1, %c0_i32_0 : i32
    scf.if %2 {
      %cst_10 = arith.constant 0.000000e+00 : f32
      %12 = vector.broadcast %cst_10 : f32 to vector<8x128xf32>
      %c0_11 = arith.constant 0 : index
      %c0_12 = arith.constant 0 : index
      %13 = vector.load %arg6[%c0_11, %c0_12] : memref<8x128xf32, #tpu.memory_space<vmem>>, vector<8x128xf32>
      tpu.vector_store %arg6[%c0_11, %c0_12], %12 {strides = array<i32>} : memref<8x128xf32, #tpu.memory_space<vmem>>, vector<8x128xf32>,
    } else {
    }
    %c0 = arith.constant 0 : index
    %c0_1 = arith.constant 0 : index
    %3 = vector.load %arg6[%c0, %c0_1] : memref<8x128xf32, #tpu.memory_space<vmem>>, vector<8x128xf32>
    %c0_2 = arith.constant 0 : index
    %c0_3 = arith.constant 0 : index
    %4 = vector.load %arg2[%c0_2, %c0_3] : memref<8x32xf32, #tpu.memory_space<vmem>>, vector<8x32xf32>
    %c0_4 = arith.constant 0 : index
    %c0_5 = arith.constant 0 : index
    %5 = vector.load %arg3[%c0_4, %c0_5] : memref<32x128xf32, #tpu.memory_space<vmem>>, vector<32x128xf32>
    %cst = arith.constant dense<0.000000e+00> : vector<8x128xf32>
    %6 = tpu.matmul %4, %5, %cst {dimension_numbers = #tpu.dot_dimension_numbers<[1], [0], [0], [1], [0, 0, 1, 1], [], []>} : vector<8x32xf32>, vector<32x128xf32>, vector<8x128xf32> -> vector<8x128xf32>
    %7 = arith.addf %3, %6 : vector<8x128xf32>
    %c0_6 = arith.constant 0 : index
    %c0_7 = arith.constant 0 : index
    %8 = vector.load %arg6[%c0_6, %c0_7] : memref<8x128xf32, #tpu.memory_space<vmem>>, vector<8x128xf32>
    tpu.vector_store %arg6[%c0_6, %c0_7], %7 {strides = array<i32>} : memref<8x128xf32, #tpu.memory_space<vmem>>, vector<8x128xf32>,
    %c0_i32_8 = arith.constant 0 : i32
    %9 = arith.cmpi eq, %arg1, %c0_i32_8 : i32
    %10 = arith.extui %9 : i1 to i32
    %c0_i32_9 = arith.constant 0 : i32
    %11 = arith.cmpi ne, %10, %c0_i32_9 : i32
    scf.if %11 {
      %c0_10 = arith.constant 0 : index
      %c0_11 = arith.constant 0 : index
      %12 = vector.load %arg6[%c0_10, %c0_11] : memref<8x128xf32, #tpu.memory_space<vmem>>, vector<8x128xf32>
      %c0_12 = arith.constant 0 : index
      %c0_13 = arith.constant 0 : index
      %13 = vector.load %arg4[%c0_12, %c0_13] : memref<1x128xf32, #tpu.memory_space<vmem>>, vector<1x128xf32>
      %14 = vector.broadcast %13 : vector<1x128xf32> to vector<8x128xf32>
      %15 = arith.addf %12, %14 : vector<8x128xf32>
      %c0_14 = arith.constant 0 : index
      %c0_15 = arith.constant 0 : index
      %16 = vector.load %arg5[%c0_14, %c0_15] : memref<8x128xf32, #tpu.memory_space<vmem>>, vector<8x128xf32>
      tpu.vector_store %arg5[%c0_14, %c0_15], %15 {strides = array<i32>} : memref<8x128xf32, #tpu.memory_space<vmem>>, vector<8x128xf32>,
    } else {
    }
    return
  }
  func.func @transform_0(%arg0: i32, %arg1: i32) -> (i32, i32) {
    %c0_i32 = arith.constant 0 : i32
    return %arg0, %arg1 : i32, i32
  }
  func.func @transform_1(%arg0: i32, %arg1: i32) -> (i32, i32) {
    %c0_i32 = arith.constant 0 : i32
    %c0_i32_0 = arith.constant 0 : i32
    return %arg1, %c0_i32 : i32, i32
  }
  func.func @transform_2(%arg0: i32, %arg1: i32) -> (i32, i32) {
    %c0_i32 = arith.constant 0 : i32
    %c0_i32_0 = arith.constant 0 : i32
    %c0_i32_1 = arith.constant 0 : i32
    return %c0_i32, %c0_i32_0 : i32, i32
  }
  func.func @transform_3(%arg0: i32, %arg1: i32) -> (i32, i32) {
    %c0_i32 = arith.constant 0 : i32
    %c0_i32_0 = arith.constant 0 : i32
    return %arg0, %c0_i32 : i32, i32
  }
}

</mosaic_0001>

<bundles_post_ra>
// kernel: tpu_custom_call.1
= control target key start
LH: loop header
LB: loop body
LE: loop exit
PB: predicated region body
PF: predicated region fallthrough
CT: control target
= control target key end

     0   :  { %8 = vsyncpa [#allocation4], 0  ;;  %s246_s0 = inlined_call_operand.hbm [shape: f32[2,32], index: 0, kind: input, shape index: {}]   ;;  %s247_s1 = inlined_call_operand.hbm [shape: f32[32,128], index: 1, kind: input, shape index: {}]   ;;  %s248_s2 = inlined_call_operand.vmem [shape: f32[1,128], index: 2, kind: input, shape index: {}]   ;;  %s249_s3 = inlined_call_operand.hbm [shape: f32[2,128], index: 3, kind: output, shape index: {}]  }
   0x1   :  { %9 = vsyncpa [#allocation7], 0 }
   0x2   :  { %10 = vsyncpa [#allocation5], 0 }
   0x3   :  { %14 = vsyncadd [#allocation4], 96  ;;  %s15_s14 = sshll.u32 %s246_s0, 4  ;;  %s201_s15 = smov [#allocation3]   ;;  %s16_s14 = int_to_ptr.hbm [resolvable:$true] %s15_s14 }
   0x4   :  { %s17_s16 = sshll.u32 %s201_s15, 4  ;;  %s28_s19 = sshll.u32 %s247_s1, 4  ;;  %s18_s16 = int_to_ptr.vmem [resolvable:$true] %s17_s16  ;;  %s29_s19 = int_to_ptr.hbm [resolvable:$true] %s28_s19 }
   0x5   :  { %s202_s20 = smov 32   ;;  %s203_s21 = smov 2  }
   0x6   :  { %23 = dma.hbm_to_vmem [thread:$0]  %s16_s14, 32, %s18_s16, [#allocation4], %s202_s20, %s202_s20, %s203_s21  }
   0x7   :  { %s204_s22 = smov [#allocation6]   ;;  %s205_s24 = smov 128  }
   0x8   :  { %s30_s23 = sshll.u32 %s204_s22, 4  ;;  %s206_s0 = smov 8   ;;  %s31_s23 = int_to_ptr.vmem [resolvable:$true] %s30_s23 }
   0x9   :  { %36 = dma.hbm_to_vmem [thread:$0]  %s29_s19, 512, %s31_s23, [#allocation7], %s205_s24, %s205_s24, %s206_s0  }
   0xa   :  { %195 = dma.done.wait [#allocation4], 128  }
   0xb   :  { %196 = vsyncadd [#allocation4], 4294967168 }
   0xc   :  { %197 = dma.done.wait [#allocation7], 512  }
   0xd   :  { %198 = vsyncadd [#allocation7], 4294966784  ;;  %v57_v0 = vld [vmem:[#allocation6 + $0x18] sm:$0xff]  ;;  %v56_v1 = vld [vmem:[#allocation6 + $0x10] sm:$0xff]  ;;  %vm58_vm0 = vcmask 261120  }
   0xe   :  { %74 = vmatpush.msra.mxu0 %v57_v0  ;;  %v55_v2 = vld [vmem:[#allocation6 + $0x8] sm:$0xff]  ;;  %v54_v3 = vld [vmem:[#allocation6] sm:$0xff]  ;;  %v53_v4 = vld [vmem:[#allocation3] sm:$0xff] }
   0xf   :  { %v122_v5 = vld [vmem:[%s248_s2] ss:$0 sm:$0xff] }
  0x10   :  { %75 = vmatpush.msra.mxu0 %v56_v1 }
  0x12   :  { %76 = vmatpush.msra.mxu0 %v55_v2 }
  0x14   :  { %77 = vmatpush.msra.mxu0 %v54_v3 }
  0x15   :  { %114 = vmatmul.msk.f32.vlgmr.msra.gmra.mxu0 %vm58_vm0, %v53_v4 }
  0x92   :  { %v79_v6 = vpop.f32.mrf.mxu0 }
  0x93   :  { %v92_v7 = vadd.f32 %v122_v5, %v79_v6 }
  0x95   :  { %93 = vst [vmem:[#allocation8] sm:$0xff] %v92_v7 }
  0x96   :  { %97 = vsyncadd [#allocation5], 96  ;;  %s100_s28 = sshll.u32 %s249_s3, 4  ;;  %s207_s29 = smov [#allocation8]   ;;  %s101_s28 = int_to_ptr.hbm [resolvable:$true] %s100_s28 }
  0x97   :  { %s98_s30 = sshll.u32 %s207_s29, 4  ;;  %s99_s30 = int_to_ptr.vmem [resolvable:$true] %s98_s30 }
  0x98   :  { %106 = dma.vmem_to_hbm [thread:$0]  %s99_s30, 32, %s101_s28, [#allocation5], %s202_s20, %s202_s20, %s203_s21  }
  0x99   :  { %199 = dma.done.wait [#allocation5], 128  }
  0x9a   :  { %200 = vsyncadd [#allocation5], 4294967168 }
  0x9b   :  { %111 = vsyncpa [#allocation4], 1 }
  0x9c   :  { %112 = vsyncpa [#allocation7], 1 }
  0x9d   :  { %113 = vsyncpa [#allocation5], 1 }

</bundles_post_ra>
